<compile_context>
chip_gen: v7x
topology: tpu7x:2x2x1
jax: 0.10.0
libtpu: 0.0.40
codegen_flags: <defaults>
</compile_context>

<pallas_src>
import functools
import math

import jax
import jax.numpy as jnp
from jax.experimental import pallas as pl
from jax.experimental.pallas import tpu as pltpu


_VMEM_BUDGET = 36 * 1024 * 1024     # target bytes of live (double-buffered) blocks
_VMEM_LIMIT = 56 * 1024 * 1024      # scoped VMEM limit; < v7x 64 MiB physical

_CONV_PARAMS = pltpu.CompilerParams(
    dimension_semantics=("parallel", "arbitrary"),
    vmem_limit_bytes=_VMEM_LIMIT,
)
_AGG_PARAMS = pltpu.CompilerParams(
    dimension_semantics=("parallel",),
    vmem_limit_bytes=_VMEM_LIMIT,
)


def _round_up(v, m):
    return -(-v // m) * m


# ----------------------------------------------------------------------------
# Pallas kernels
# ----------------------------------------------------------------------------
def _conv_kernel(*refs, k, s, Wq, TG, relu, res_mode):
    """Fused 3x3 (or 1x1) conv: in-kernel im2col as k*k accumulated bf16 matmuls.

    x_ref : (1, 1, s*s, tile_len, Cin) bf16  phase-split, row-flattened tile (+halo)
    w_ref : (k*k, Cin, Cout)           bf16  tap-major weights
    b_ref : (1, Cout)                  f32   bias
    [r_ref: (1, TG, Cres)]             bf16  residual tile
    [rw_ref, rb_ref]                         fused 1x1 downsample projection
    o_ref : (1, TG, Cout)              bf16  output tile (garbage rows cropped in glue)
    """
    if res_mode == "none":
        x_ref, w_ref, b_ref, o_ref = refs
    elif res_mode == "add":
        x_ref, w_ref, b_ref, r_ref, o_ref = refs
    else:  # "proj"
        x_ref, w_ref, b_ref, r_ref, rw_ref, rb_ref, o_ref = refs

    acc = None
    for di in range(k):
        for dj in range(k):
            ph = (di % s) * s + (dj % s)
            off = (di // s) * Wq + (dj // s)
            patch = x_ref[0, 0, ph, off:off + TG, :]           # bf16 contiguous slab
            part = jnp.dot(patch, w_ref[di * k + dj],
                           preferred_element_type=jnp.float32)
            acc = part if acc is None else acc + part

    acc = acc + b_ref[...]                                     # f32 epilogue
    if res_mode == "add":
        acc = acc + r_ref[0].astype(jnp.float32)
    elif res_mode == "proj":
        acc = acc + (jnp.dot(r_ref[0], rw_ref[...],
                             preferred_element_type=jnp.float32) + rb_ref[...])
    if relu:
        acc = jnp.maximum(acc, 0.0)
    o_ref[0] = acc.astype(o_ref.dtype)


def _aggregator_kernel(*refs, n_mix):
    """MixVPR aggregator on the (hw, C) channels-last layout.

    FeatureMixer stack (LayerNorm over hw + MLP over hw, residual) followed by
    channel_proj, row_proj and an L2 normalize of the flattened descriptor.
    """
    x_ref = refs[0]
    mix_refs = refs[1:1 + 6 * n_mix]
    wc_ref, bc_ref, wr_ref, br_ref, o_ref = refs[1 + 6 * n_mix:]

    t = x_ref[0].astype(jnp.float32)                           # (hw, C)
    for m in range(n_mix):
        g, be, w1, b1, w2, b2 = mix_refs[6 * m:6 * m + 6]
        mu = jnp.mean(t, axis=0, keepdims=True)                # one-pass moments
        ex2 = jnp.mean(t * t, axis=0, keepdims=True)
        inv = jax.lax.rsqrt(ex2 - mu * mu + 1e-5)              # LN eps = 1e-5
        tn = (t - mu) * inv * g[...] + be[...]                 # g, be : (hw, 1)
        h = jnp.dot(w1[...], tn.astype(jnp.bfloat16),
                    preferred_element_type=jnp.float32) + b1[...]   # (hid, C)
        h = jnp.maximum(h, 0.0)
        t = t + jnp.dot(w2[...], h.astype(jnp.bfloat16),
                        preferred_element_type=jnp.float32) + b2[...]

    # channel_proj then row_proj, expressed directly in (hw, C) layout
    y = jnp.dot(t.astype(jnp.bfloat16), wc_ref[...],
                preferred_element_type=jnp.float32) + bc_ref[...]     # (hw, out_ch)
    z = jnp.dot(wr_ref[...], y.astype(jnp.bfloat16),
                preferred_element_type=jnp.float32) + br_ref[...]     # (out_rows, out_ch)

    ss = jnp.sum(z * z, axis=-1, keepdims=True)
    ss = jnp.sum(ss, axis=0, keepdims=True)                    # (1, 1)
    inv = jax.lax.rsqrt(jnp.maximum(ss, 1e-24))                # == 1/max(||z||, 1e-12)
    o_ref[0] = z * inv


def _heads_kernel(*refs):
    """x_final = 0.5*local + 0.5*global, then two fused 4-layer MLP heads -> (B, 6)."""
    xl_ref, xg_ref = refs[0], refs[1]
    o_ref = refs[-1]
    wb = refs[2:-1]                                            # 16 refs: 8 (w, b) pairs
    x = 0.5 * xl_ref[...].astype(jnp.float32) + 0.5 * xg_ref[...]

    def run_head(base):
        h = x
        for li in range(4):
            w_ref, b_ref = wb[base + 2 * li], wb[base + 2 * li + 1]
            h = jnp.dot(h.astype(jnp.bfloat16), w_ref[...],
                        preferred_element_type=jnp.float32) + b_ref[...]
            if li < 3:                                         # ReLU on first 3 linears
                h = jnp.maximum(h, 0.0)
        return h

    o_ref[:, 0:3] = run_head(0)                                # trans
    o_ref[:, 3:6] = run_head(8)                                # rot


# ----------------------------------------------------------------------------
# conv glue: bf16 NHWC, fused epilogues, (batch, row-tile) grid
# ----------------------------------------------------------------------------
def _pick_row_tile(GW, P, Cin, Cout, Cres, halo_pad):
    """Largest 16-aligned row tile whose double-buffered blocks fit the VMEM budget."""
    gw16 = _round_up(max(GW, 8), 16)
    per_row = 2 * 2 * (P * Cin + Cout + Cres)                  # bf16, double-buffered
    fixed = 2 * 2 * P * halo_pad * Cin
    tg_fit = (_VMEM_BUDGET - fixed) // max(per_row, 1)
    tg = max(256, (tg_fit // 16) * 16)
    return min(gw16, tg)


def conv2d(x, p, *, stride, relu, residual=None, res_proj=None,
           kernel_size=3, padding=1, row_tile=None):
    """kxk conv on NHWC input via the fused Pallas conv kernel (bf16 activations)."""
    B, H, W, Cin = x.shape
    w, b = p["w"], p["b"]                      # (k*k, Cin, Cout) bf16, (1, Cout) f32
    Cout = w.shape[-1]
    k, s, pad = kernel_size, stride, padding
    Ho = (H + 2 * pad - k) // s + 1
    Wo = (W + 2 * pad - k) // s + 1

    # Zero-pad, then split into s*s phases so every in-kernel tap window is a
    # CONTIGUOUS slab of the row-flattened input (no strided VMEM reads).
    Hp, Wp = H + 2 * pad, W + 2 * pad
    Hq, Wq = -(-Hp // s), -(-Wp // s)
    xp = jnp.pad(x.astype(jnp.bfloat16),
                 ((0, 0), (pad, Hq * s - Hp + pad), (pad, Wq * s - Wp + pad), (0, 0)))
    if s == 1:
        phases = xp[:, None]                                   # (B, 1, Hq, Wq, C)
    else:
        phases = jnp.stack([xp[:, r::s, c::s, :] for r in range(s) for c in range(s)],
                           axis=1)                             # (B, s*s, Hq, Wq, C)
    P = phases.shape[1]
    GW = Ho * Wq                                               # flattened rows (+garbage cols)
    dmax = (k - 1) // s
    halo = dmax * (Wq + 1)
    halo_pad = _round_up(halo, 16) if halo else 0
    L = Hq * Wq

    Cres = residual.shape[-1] if residual is not None else 0
    if row_tile is not None:
        TG = min(max(16, _round_up(row_tile, 16)), _round_up(GW, 16))
    else:
        TG = _pick_row_tile(GW, P, Cin, Cout, Cres, halo_pad)
    n_g = -(-GW // TG)
    GWp = n_g * TG
    tile_len = TG + halo_pad
    Lpad = _round_up(max(L, (n_g - 1) * TG + tile_len), 16)
    if n_g == 1:
        tile_len = Lpad                                        # pure reshape, no copy

    xf = phases.reshape(B, P, L, Cin)
    if Lpad > L:
        xf = jnp.pad(xf, ((0, 0), (0, 0), (0, Lpad - L), (0, 0)))
    if n_g == 1:
        xt = xf[:, None]                                       # (B, 1, P, Lpad, Cin)
    else:
        # duplicate the small halo into each row tile so blocks stay plain Blocked
        xt = jnp.stack([xf[:, :, g * TG:g * TG + tile_len, :] for g in range(n_g)],
                       axis=1)                                 # (B, n_g, P, tile_len, Cin)

    operands = [xt, w, b]
    in_specs = [
        pl.BlockSpec((1, 1, P, tile_len, Cin), lambda bb, gg: (bb, gg, 0, 0, 0)),
        pl.BlockSpec((k * k, Cin, Cout), lambda bb, gg: (0, 0, 0)),
        pl.BlockSpec((1, Cout), lambda bb, gg: (0, 0)),
    ]
    res_mode = "none"
    if residual is not None:
        rf = jnp.pad(residual.astype(jnp.bfloat16),
                     ((0, 0), (0, 0), (0, Wq - Wo), (0, 0))).reshape(B, GW, Cres)
        if GWp > GW:
            rf = jnp.pad(rf, ((0, 0), (0, GWp - GW), (0, 0)))
        operands.append(rf)
        in_specs.append(pl.BlockSpec((1, TG, Cres), lambda bb, gg: (bb, gg, 0)))
        if res_proj is None:
            res_mode = "add"
        else:
            res_mode = "proj"
            operands += [res_proj["w"].reshape(Cres, Cout), res_proj["b"]]
            in_specs += [pl.BlockSpec((Cres, Cout), lambda bb, gg: (0, 0)),
                         pl.BlockSpec((1, Cout), lambda bb, gg: (0, 0))]

    out = pl.pallas_call(
        functools.partial(_conv_kernel, k=k, s=s, Wq=Wq, TG=TG, relu=relu,
                          res_mode=res_mode),
        grid=(B, n_g),
        out_shape=jax.ShapeDtypeStruct((B, GWp, Cout), jnp.bfloat16),
        in_specs=in_specs,
        out_specs=pl.BlockSpec((1, TG, Cout), lambda bb, gg: (bb, gg, 0)),
        compiler_params=_CONV_PARAMS,
    )(*operands)
    return out[:, :GW].reshape(B, Ho, Wq, Cout)[:, :, :Wo, :]


def _im2col_small(x, k, stride, pad):
    """Glue-side im2col for small-Cin convs: fold the k*k taps into the channel dim."""
    B, H, W, C = x.shape
    Ho = (H + 2 * pad - k) // stride + 1
    Wo = (W + 2 * pad - k) // stride + 1
    xp = jnp.pad(x, ((0, 0), (pad, pad), (pad, pad), (0, 0)))
    cols = [xp[:, di:di + stride * (Ho - 1) + 1:stride,
               dj:dj + stride * (Wo - 1) + 1:stride, :]
            for di in range(k) for dj in range(k)]
    return jnp.concatenate(cols, axis=-1)                      # (B, Ho, Wo, k*k*C)


def res_layer_fwd(layer, x):
    # First block: stride-2 conv1 (+ReLU), then conv2 with the 1x1 stride-2
    # downsample projection, residual add and ReLU all fused into one kernel.
    first = layer["first"]
    out = conv2d(x, first["conv1"], stride=2, relu=True)
    Ho, Wo = out.shape[1], out.shape[2]
    res_raw = x[:, ::2, ::2, :][:, :Ho, :Wo, :]
    x = conv2d(out, first["conv2"], stride=1, relu=True,
               residual=res_raw, res_proj=first["down"])
    # Remaining identical blocks: identity residual; lax.scan so the two conv
    # kernels of the repeated block are traced/compiled exactly once per layer.
    if layer["rest"] is not None:
        def body(h, blk):
            o = conv2d(h, blk["conv1"], stride=1, relu=True)
            o = conv2d(o, blk["conv2"], stride=1, relu=True, residual=h)
            return o, None
        x, _ = jax.lax.scan(body, x, layer["rest"])
    return x


def conv_stack_fwd(p, x):
    for idx, cp in enumerate(p["firstconv"]):
        stride = 2 if idx == 0 else 1
        kk, cin, cout = cp["w"].shape
        if kk > 1 and kk * cin <= 64:
            # Tiny-Cin conv: fold the 9 taps into K (one K=9*Cin matmul, full MXU depth)
            k = int(round(math.sqrt(kk)))
            xcol = _im2col_small(x, k, stride, 1)
            x = conv2d(xcol, {"w": cp["w"].reshape(1, kk * cin, cout), "b": cp["b"]},
                       stride=1, relu=True, kernel_size=1, padding=0)
        else:
            x = conv2d(x, cp, stride=stride, relu=True)
    i = 1
    while f"layer{i}" in p:
        x = res_layer_fwd(p[f"layer{i}"], x)
        i += 1
    return x


# ----------------------------------------------------------------------------
# MixVPR aggregator + pose heads (single fused kernels)
# ----------------------------------------------------------------------------
def mixvpr_aggregate(g, x_hwc):
    """x_hwc: (B, hw, C) bf16, channels-last (no HBM transpose needed on the vo path)."""
    B, hw, C = x_hwc.shape
    cp, rp = g["channel_proj"], g["row_proj"]
    out_ch = cp["w"].shape[1]
    out_rows = rp["w"].shape[0]

    operands = [x_hwc]
    in_specs = [pl.BlockSpec((1, hw, C), lambda i: (i, 0, 0))]
    for m in g["mix"]:
        hid = m["w1"].shape[0]
        operands += [m["gamma"], m["beta"], m["w1"], m["b1"], m["w2"], m["b2"]]
        in_specs += [pl.BlockSpec((hw, 1), lambda i: (0, 0)),
                     pl.BlockSpec((hw, 1), lambda i: (0, 0)),
                     pl.BlockSpec((hid, hw), lambda i: (0, 0)),
                     pl.BlockSpec((hid, 1), lambda i: (0, 0)),
                     pl.BlockSpec((hw, hid), lambda i: (0, 0)),
                     pl.BlockSpec((hw, 1), lambda i: (0, 0))]
    operands += [cp["w"], cp["b"], rp["w"], rp["b"].reshape(out_rows, 1)]
    in_specs += [pl.BlockSpec((C, out_ch), lambda i: (0, 0)),
                 pl.BlockSpec((1, out_ch), lambda i: (0, 0)),
                 pl.BlockSpec((out_rows, hw), lambda i: (0, 0)),
                 pl.BlockSpec((out_rows, 1), lambda i: (0, 0))]

    out = pl.pallas_call(
        functools.partial(_aggregator_kernel, n_mix=len(g["mix"])),
        grid=(B,),
        out_shape=jax.ShapeDtypeStruct((B, out_rows, out_ch), jnp.float32),
        in_specs=in_specs,
        out_specs=pl.BlockSpec((1, out_rows, out_ch), lambda i: (i, 0, 0)),
        compiler_params=_AGG_PARAMS,
    )(*operands)
    # reference flattens (out_channels, out_rows) channel-major; tiny transpose in glue
    return jnp.transpose(out, (0, 2, 1)).reshape(B, out_ch * out_rows)


def heads_fwd(params, x_local, x_global):
    B = x_local.shape[0]
    operands = [x_local, x_global]
    for name in ("trans", "rot"):
        for lin in params[name]:
            operands += [lin["w"], lin["b"]]
    vmem = pl.BlockSpec(memory_space=pltpu.MemorySpace.VMEM)
    return pl.pallas_call(
        _heads_kernel,
        out_shape=jax.ShapeDtypeStruct((B, 6), jnp.float32),
        in_specs=[vmem] * len(operands),
        out_specs=vmem,
    )(*operands)


# ----------------------------------------------------------------------------
# forward passes (one jax.jit over the whole model)
# ----------------------------------------------------------------------------
def voflowres_fwd(p, x_nhwc):
    x = conv_stack_fwd(p, x_nhwc)
    # match the reference's NCHW x.view(B, -1) flatten order (tiny tensor here)
    return jnp.transpose(x, (0, 3, 1, 2)).reshape(x.shape[0], -1)


def mixvpr_fwd(g, x, stage):
    if stage == "vpr":
        B, C = x.shape[0], x.shape[1]              # x is the NCHW vpr_feature
        x_hwc = jnp.transpose(x.reshape(B, C, -1), (0, 2, 1)).astype(jnp.bfloat16)
    else:
        xh = conv_stack_fwd(g, x)                  # NHWC bf16
        B = xh.shape[0]
        x_hwc = xh.reshape(B, xh.shape[1] * xh.shape[2], xh.shape[3])
    return mixvpr_aggregate(g, x_hwc)


@functools.partial(jax.jit, static_argnames=("stage",))
def vprposenet_fwd(params, stage, x=None, vpr_feature=None):
    if stage == "vpr":
        return mixvpr_fwd(params["global"], vpr_feature, stage)
    x_nhwc = jnp.transpose(x, (0, 2, 3, 1)).astype(jnp.bfloat16)   # single layout change
    x_local = voflowres_fwd(params["local"], x_nhwc)
    x_global = mixvpr_fwd(params["global"], x_nhwc, stage)
    return heads_fwd(params, x_local, x_global)


# ----------------------------------------------------------------------------
# parameter init (deterministic, synthetic; weights stored in kernel layouts, bf16)
# ----------------------------------------------------------------------------
class KeyGen:
    def __init__(self, key):
        self.key = key
        self.i = 0

    def __call__(self):
        self.i += 1
        return jax.random.fold_in(self.key, self.i)


def init_conv(kg, cin, cout, k=3):
    fan_in = cin * k * k
    w = jax.random.normal(kg(), (cout, cin, k, k), jnp.float32) / math.sqrt(fan_in)
    return {
        # stored pre-transposed to the kernel's tap-major (k*k, Cin, Cout) bf16 layout
        "w": jnp.transpose(w, (2, 3, 1, 0)).reshape(k * k, cin, cout).astype(jnp.bfloat16),
        "b": 0.01 * jax.random.normal(kg(), (1, cout), jnp.float32),
    }


def init_linear(kg, cin, cout, transpose=True):
    w = jax.random.normal(kg(), (cout, cin), jnp.float32) / math.sqrt(cin)
    if transpose:
        w = w.T                                    # (in, out): kernels compute x @ w
    return {"w": w.astype(jnp.bfloat16),
            "b": 0.01 * jax.random.normal(kg(), (1, cout), jnp.float32)}


def init_mixer(kg, dim, hidden):
    # TODO(synk): trunc_normal_(std=0.02) approximated by plain normal (init only).
    return {
        "gamma": jnp.ones((dim, 1), jnp.float32),
        "beta": jnp.zeros((dim, 1), jnp.float32),
        "w1": (0.02 * jax.random.normal(kg(), (hidden, dim), jnp.float32)).astype(jnp.bfloat16),
        "b1": jnp.zeros((hidden, 1), jnp.float32),
        "w2": (0.02 * jax.random.normal(kg(), (dim, hidden), jnp.float32)).astype(jnp.bfloat16),
        "b2": jnp.zeros((dim, 1), jnp.float32),
    }


def init_reslayer(kg, inplanes, planes, blocks):
    down = init_conv(kg, inplanes, planes, k=1)    # stride-2 first block always projects
    first = {"conv1": init_conv(kg, inplanes, planes, 3),
             "conv2": init_conv(kg, planes, planes, 3),
             "down": down}
    rest = [{"conv1": init_conv(kg, planes, planes, 3),
             "conv2": init_conv(kg, planes, planes, 3)} for _ in range(blocks - 1)]
    rest = jax.tree_util.tree_map(lambda *xs: jnp.stack(xs), *rest) if rest else None
    return {"first": first, "rest": rest}, planes


def _init_firstconv(kg):
    return [init_conv(kg, 4, 32, 3), init_conv(kg, 32, 32, 3), init_conv(kg, 32, 32, 3)]


def init_vprposenet(key, in_channels, in_h, in_w, out_channels, mix_depth, mlp_ratio, out_rows):
    kg = KeyGen(key)
    params = {}

    # ---- local branch: VOFlowRes (outputnums[2:9], blocknums[2:9]) ----
    local = {"firstconv": _init_firstconv(kg)}
    inpl = 32
    for i, (pln, blk) in enumerate(zip([64, 128, 128, 256, 256, 256, 256],
                                       [3, 4, 6, 7, 9, 10, 3]), start=1):
        local[f"layer{i}"], inpl = init_reslayer(kg, inpl, pln, blk)
    params["local"] = local

    # ---- global branch: MixVPR (outputnums[2:5], blocknums[2:5]) ----
    g = {"firstconv": _init_firstconv(kg)}
    inpl = 32
    for i, (pln, blk) in enumerate(zip([64, 128, 256], [3, 4, 6]), start=1):
        g[f"layer{i}"], inpl = init_reslayer(kg, inpl, pln, blk)
    hw = in_h * in_w
    g["mix"] = [init_mixer(kg, hw, int(hw * mlp_ratio)) for _ in range(mix_depth)]
    g["channel_proj"] = init_linear(kg, in_channels, out_channels, transpose=True)   # (C, out_ch)
    g["row_proj"] = init_linear(kg, hw, out_rows, transpose=False)                   # (out_rows, hw)
    params["global"] = g

    # ---- pose heads ----
    fcnum = out_channels * out_rows

    def head():
        return [init_linear(kg, fcnum, 512), init_linear(kg, 512, 128),
                init_linear(kg, 128, 32), init_linear(kg, 32, 3)]

    params["trans"] = head()
    params["rot"] = head()
    return params


# ----------------------------------------------------------------------------
# demo + small self-tests of the two nontrivial kernels against pure-JAX refs
# ----------------------------------------------------------------------------
def _conv_reference_nhwc(x, p, stride, pad):
    kk, cin, cout = p["w"].shape
    k = int(round(math.sqrt(kk)))
    w4 = p["w"].astype(jnp.float32).reshape(k, k, cin, cout)
    y = jax.lax.conv_general_dilated(
        x.astype(jnp.float32), w4, (stride, stride), [(pad, pad), (pad, pad)],
        dimension_numbers=("NHWC", "HWIO", "NHWC"))
    return y + p["b"].reshape(1, 1, 1, -1)


def _aggregator_reference(g, x_chw):
    x = x_chw.astype(jnp.float32)
    for m in g["mix"]:
        mu = x.mean(-1, keepdims=True)
        var = ((x - mu) ** 2).mean(-1, keepdims=True)
        xn = (x - mu) / jnp.sqrt(var + 1e-5) * m["gamma"][:, 0] + m["beta"][:, 0]
        h = jnp.maximum(xn @ m["w1"].astype(jnp.float32).T + m["b1"][:, 0], 0.0)
        x = x + h @ m["w2"].astype(jnp.float32).T + m["b2"][:, 0]
    y = jnp.swapaxes(x, 1, 2) @ g["channel_proj"]["w"].astype(jnp.float32) + g["channel_proj"]["b"]
    z = jnp.swapaxes(y, 1, 2) @ g["row_proj"]["w"].astype(jnp.float32).T + g["row_proj"]["b"]
    zf = z.reshape(z.shape[0], -1)
    nrm = jnp.maximum(jnp.linalg.norm(zf, axis=-1, keepdims=True), 1e-12)
    return zf / nrm


if __name__ == "__main__":
    key = jax.random.PRNGKey(0)
    pkey, xkey, vkey, tkey = jax.random.split(key, 4)

    # Small, self-consistent configuration:
    #  - input x: (B, 4, 32, 32) -> MixVPR conv stack outputs (B, 2, 2, 256) NHWC
    #    => in_channels=256, in_h=in_w=2 ; VOFlowRes flattens to (B, 256)
    #  - out_channels*out_rows = 256 so 0.5*local + 0.5*global is shape-valid.
    B, Hin, Win = 2, 32, 32
    in_channels, in_h, in_w = 256, 2, 2
    out_channels, out_rows = 64, 4

    params = init_vprposenet(pkey, in_channels, in_h, in_w, out_channels,
                             mix_depth=1, mlp_ratio=1, out_rows=out_rows)

    x = jax.random.normal(xkey, (B, 4, Hin, Win), jnp.float32)
    vpr_feature = jax.random.normal(vkey, (B, in_channels, in_h, in_w), jnp.float32)

    # -- self-test 1: conv kernel (row-tiled/halo path and stride-2 phase path) --
    kgt = KeyGen(tkey)
    xt = jax.random.normal(kgt(), (1, 24, 20, 8), jnp.float32).astype(jnp.bfloat16)
    pt = init_conv(kgt, 8, 16, 3)
    yk = conv2d(xt, pt, stride=1, relu=False, row_tile=64)      # forces n_g > 1 (halo tiles)
    yr = _conv_reference_nhwc(xt, pt, 1, 1)
    assert bool(jnp.allclose(yk.astype(jnp.float32), yr, atol=0.06, rtol=0.05)), "conv tiled mismatch"
    yk2 = conv2d(xt, pt, stride=2, relu=False)
    yr2 = _conv_reference_nhwc(xt, pt, 2, 1)
    assert bool(jnp.allclose(yk2.astype(jnp.float32), yr2, atol=0.06, rtol=0.05)), "conv s2 mismatch"

    # -- run the model: 'vpr' branch and full 'vo' branch --
    emb = vprposenet_fwd(params, stage="vpr", vpr_feature=vpr_feature)
    pose = vprposenet_fwd(params, stage="vo", x=x)
    emb, pose = jax.block_until_ready((emb, pose))

    # -- self-test 2: aggregator vs. pure-JAX reference (same bf16-rounded input) --
    vpr_q = vpr_feature.astype(jnp.bfloat16).astype(jnp.float32)
    emb_ref = _aggregator_reference(params["global"],
                                    vpr_q.reshape(B, in_channels, in_h * in_w))
    assert bool(jnp.allclose(emb, emb_ref, atol=0.02, rtol=0.05)), "aggregator mismatch"

    assert emb.shape == (B, out_channels * out_rows)
    assert pose.shape == (B, 6)
    assert bool(jnp.all(jnp.isfinite(emb))) and bool(jnp.all(jnp.isfinite(pose)))
    print("KERNEL_OK")
</pallas_src>

<mosaic_0001>
module attributes {stable_mosaic.version = 11 : i64} {
  func.func @_conv_kernel(%arg0: i32, %arg1: i32, %arg2: memref<1x1x1x112x8xbf16, #tpu.memory_space<vmem>>, %arg3: memref<9x8x16xbf16, #tpu.memory_space<vmem>>, %arg4: memref<1x16xf32, #tpu.memory_space<vmem>>, %arg5: memref<1x64x16xbf16, #tpu.memory_space<vmem>>) attributes {dimension_semantics = [#tpu.dimension_semantics<parallel>, #tpu.dimension_semantics<arbitrary>], iteration_bounds = array<i64: 1, 9>, scalar_prefetch = 0 : i64, scratch_operands = 0 : i64, tpu.core_type = #tpu.core_type<tc>, window_params = [{transform_indices = @transform_0, window_bounds = array<i64: 1, 1, 1, 112, 8>}, {pipeline_mode = #tpu.pipeline_mode<synchronous>, transform_indices = @transform_1, window_bounds = array<i64: 9, 8, 16>}, {pipeline_mode = #tpu.pipeline_mode<synchronous>, transform_indices = @transform_2, window_bounds = array<i64: 1, 16>}, {transform_indices = @transform_3, window_bounds = array<i64: 1, 64, 16>}]} {
    %c0 = arith.constant 0 : index
    %c0_0 = arith.constant 0 : index
    %c0_1 = arith.constant 0 : index
    %c0_2 = arith.constant 0 : index
    %c0_3 = arith.constant 0 : index
    %0 = vector.load %arg2[%c0, %c0_0, %c0_1, %c0_2, %c0_3] : memref<1x1x1x112x8xbf16, #tpu.memory_space<vmem>>, vector<1x1x1x64x8xbf16>
    %1 = vector.shape_cast %0 : vector<1x1x1x64x8xbf16> to vector<64x8xbf16>
    %c0_4 = arith.constant 0 : index
    %c0_5 = arith.constant 0 : index
    %c0_6 = arith.constant 0 : index
    %2 = vector.load %arg3[%c0_4, %c0_5, %c0_6] : memref<9x8x16xbf16, #tpu.memory_space<vmem>>, vector<1x8x16xbf16>
    %3 = vector.shape_cast %2 : vector<1x8x16xbf16> to vector<8x16xbf16>
    %cst = arith.constant dense<0.000000e+00> : vector<64x16xf32>
    %4 = tpu.matmul %1, %3, %cst {dimension_numbers = #tpu.dot_dimension_numbers<[1], [0], [0], [1], [0, 0, 1, 1], [], []>} : vector<64x8xbf16>, vector<8x16xbf16>, vector<64x16xf32> -> vector<64x16xf32>
    %c0_7 = arith.constant 0 : index
    %c0_8 = arith.constant 0 : index
    %c0_9 = arith.constant 0 : index
    %c1 = arith.constant 1 : index
    %c0_10 = arith.constant 0 : index
    %5 = vector.load %arg2[%c0_7, %c0_8, %c0_9, %c1, %c0_10] : memref<1x1x1x112x8xbf16, #tpu.memory_space<vmem>>, vector<1x1x1x64x8xbf16>
    %6 = vector.shape_cast %5 : vector<1x1x1x64x8xbf16> to vector<64x8xbf16>
    %c1_11 = arith.constant 1 : index
    %c0_12 = arith.constant 0 : index
    %c0_13 = arith.constant 0 : index
    %7 = vector.load %arg3[%c1_11, %c0_12, %c0_13] : memref<9x8x16xbf16, #tpu.memory_space<vmem>>, vector<1x8x16xbf16>
    %8 = vector.shape_cast %7 : vector<1x8x16xbf16> to vector<8x16xbf16>
    %cst_14 = arith.constant dense<0.000000e+00> : vector<64x16xf32>
    %9 = tpu.matmul %6, %8, %cst_14 {dimension_numbers = #tpu.dot_dimension_numbers<[1], [0], [0], [1], [0, 0, 1, 1], [], []>} : vector<64x8xbf16>, vector<8x16xbf16>, vector<64x16xf32> -> vector<64x16xf32>
    %10 = arith.addf %4, %9 : vector<64x16xf32>
    %c0_15 = arith.constant 0 : index
    %c0_16 = arith.constant 0 : index
    %c0_17 = arith.constant 0 : index
    %c2 = arith.constant 2 : index
    %c0_18 = arith.constant 0 : index
    %11 = vector.load %arg2[%c0_15, %c0_16, %c0_17, %c2, %c0_18] : memref<1x1x1x112x8xbf16, #tpu.memory_space<vmem>>, vector<1x1x1x64x8xbf16>
    %12 = vector.shape_cast %11 : vector<1x1x1x64x8xbf16> to vector<64x8xbf16>
    %c2_19 = arith.constant 2 : index
    %c0_20 = arith.constant 0 : index
    %c0_21 = arith.constant 0 : index
    %13 = vector.load %arg3[%c2_19, %c0_20, %c0_21] : memref<9x8x16xbf16, #tpu.memory_space<vmem>>, vector<1x8x16xbf16>
    %14 = vector.shape_cast %13 : vector<1x8x16xbf16> to vector<8x16xbf16>
    %cst_22 = arith.constant dense<0.000000e+00> : vector<64x16xf32>
    %15 = tpu.matmul %12, %14, %cst_22 {dimension_numbers = #tpu.dot_dimension_numbers<[1], [0], [0], [1], [0, 0, 1, 1], [], []>} : vector<64x8xbf16>, vector<8x16xbf16>, vector<64x16xf32> -> vector<64x16xf32>
    %16 = arith.addf %10, %15 : vector<64x16xf32>
    %c0_23 = arith.constant 0 : index
    %c0_24 = arith.constant 0 : index
    %c0_25 = arith.constant 0 : index
    %c22 = arith.constant 22 : index
    %c0_26 = arith.constant 0 : index
    %17 = vector.load %arg2[%c0_23, %c0_24, %c0_25, %c22, %c0_26] : memref<1x1x1x112x8xbf16, #tpu.memory_space<vmem>>, vector<1x1x1x64x8xbf16>
    %18 = vector.shape_cast %17 : vector<1x1x1x64x8xbf16> to vector<64x8xbf16>
    %c3 = arith.constant 3 : index
    %c0_27 = arith.constant 0 : index
    %c0_28 = arith.constant 0 : index
    %19 = vector.load %arg3[%c3, %c0_27, %c0_28] : memref<9x8x16xbf16, #tpu.memory_space<vmem>>, vector<1x8x16xbf16>
    %20 = vector.shape_cast %19 : vector<1x8x16xbf16> to vector<8x16xbf16>
    %cst_29 = arith.constant dense<0.000000e+00> : vector<64x16xf32>
    %21 = tpu.matmul %18, %20, %cst_29 {dimension_numbers = #tpu.dot_dimension_numbers<[1], [0], [0], [1], [0, 0, 1, 1], [], []>} : vector<64x8xbf16>, vector<8x16xbf16>, vector<64x16xf32> -> vector<64x16xf32>
    %22 = arith.addf %16, %21 : vector<64x16xf32>
    %c0_30 = arith.constant 0 : index
    %c0_31 = arith.constant 0 : index
    %c0_32 = arith.constant 0 : index
    %c23 = arith.constant 23 : index
    %c0_33 = arith.constant 0 : index
    %23 = vector.load %arg2[%c0_30, %c0_31, %c0_32, %c23, %c0_33] : memref<1x1x1x112x8xbf16, #tpu.memory_space<vmem>>, vector<1x1x1x64x8xbf16>
    %24 = vector.shape_cast %23 : vector<1x1x1x64x8xbf16> to vector<64x8xbf16>
    %c4 = arith.constant 4 : index
    %c0_34 = arith.constant 0 : index
    %c0_35 = arith.constant 0 : index
    %25 = vector.load %arg3[%c4, %c0_34, %c0_35] : memref<9x8x16xbf16, #tpu.memory_space<vmem>>, vector<1x8x16xbf16>
    %26 = vector.shape_cast %25 : vector<1x8x16xbf16> to vector<8x16xbf16>
    %cst_36 = arith.constant dense<0.000000e+00> : vector<64x16xf32>
    %27 = tpu.matmul %24, %26, %cst_36 {dimension_numbers = #tpu.dot_dimension_numbers<[1], [0], [0], [1], [0, 0, 1, 1], [], []>} : vector<64x8xbf16>, vector<8x16xbf16>, vector<64x16xf32> -> vector<64x16xf32>
    %28 = arith.addf %22, %27 : vector<64x16xf32>
    %c0_37 = arith.constant 0 : index
    %c0_38 = arith.constant 0 : index
    %c0_39 = arith.constant 0 : index
    %c24 = arith.constant 24 : index
    %c0_40 = arith.constant 0 : index
    %29 = vector.load %arg2[%c0_37, %c0_38, %c0_39, %c24, %c0_40] : memref<1x1x1x112x8xbf16, #tpu.memory_space<vmem>>, vector<1x1x1x64x8xbf16>
    %30 = vector.shape_cast %29 : vector<1x1x1x64x8xbf16> to vector<64x8xbf16>
    %c5 = arith.constant 5 : index
    %c0_41 = arith.constant 0 : index
    %c0_42 = arith.constant 0 : index
    %31 = vector.load %arg3[%c5, %c0_41, %c0_42] : memref<9x8x16xbf16, #tpu.memory_space<vmem>>, vector<1x8x16xbf16>
    %32 = vector.shape_cast %31 : vector<1x8x16xbf16> to vector<8x16xbf16>
    %cst_43 = arith.constant dense<0.000000e+00> : vector<64x16xf32>
    %33 = tpu.matmul %30, %32, %cst_43 {dimension_numbers = #tpu.dot_dimension_numbers<[1], [0], [0], [1], [0, 0, 1, 1], [], []>} : vector<64x8xbf16>, vector<8x16xbf16>, vector<64x16xf32> -> vector<64x16xf32>
    %34 = arith.addf %28, %33 : vector<64x16xf32>
    %c0_44 = arith.constant 0 : index
    %c0_45 = arith.constant 0 : index
    %c0_46 = arith.constant 0 : index
    %c44 = arith.constant 44 : index
    %c0_47 = arith.constant 0 : index
    %35 = vector.load %arg2[%c0_44, %c0_45, %c0_46, %c44, %c0_47] : memref<1x1x1x112x8xbf16, #tpu.memory_space<vmem>>, vector<1x1x1x64x8xbf16>
    %36 = vector.shape_cast %35 : vector<1x1x1x64x8xbf16> to vector<64x8xbf16>
    %c6 = arith.constant 6 : index
    %c0_48 = arith.constant 0 : index
    %c0_49 = arith.constant 0 : index
    %37 = vector.load %arg3[%c6, %c0_48, %c0_49] : memref<9x8x16xbf16, #tpu.memory_space<vmem>>, vector<1x8x16xbf16>
    %38 = vector.shape_cast %37 : vector<1x8x16xbf16> to vector<8x16xbf16>
    %cst_50 = arith.constant dense<0.000000e+00> : vector<64x16xf32>
    %39 = tpu.matmul %36, %38, %cst_50 {dimension_numbers = #tpu.dot_dimension_numbers<[1], [0], [0], [1], [0, 0, 1, 1], [], []>} : vector<64x8xbf16>, vector<8x16xbf16>, vector<64x16xf32> -> vector<64x16xf32>
    %40 = arith.addf %34, %39 : vector<64x16xf32>
    %c0_51 = arith.constant 0 : index
    %c0_52 = arith.constant 0 : index
    %c0_53 = arith.constant 0 : index
    %c45 = arith.constant 45 : index
    %c0_54 = arith.constant 0 : index
    %41 = vector.load %arg2[%c0_51, %c0_52, %c0_53, %c45, %c0_54] : memref<1x1x1x112x8xbf16, #tpu.memory_space<vmem>>, vector<1x1x1x64x8xbf16>
    %42 = vector.shape_cast %41 : vector<1x1x1x64x8xbf16> to vector<64x8xbf16>
    %c7 = arith.constant 7 : index
    %c0_55 = arith.constant 0 : index
    %c0_56 = arith.constant 0 : index
    %43 = vector.load %arg3[%c7, %c0_55, %c0_56] : memref<9x8x16xbf16, #tpu.memory_space<vmem>>, vector<1x8x16xbf16>
    %44 = vector.shape_cast %43 : vector<1x8x16xbf16> to vector<8x16xbf16>
    %cst_57 = arith.constant dense<0.000000e+00> : vector<64x16xf32>
    %45 = tpu.matmul %42, %44, %cst_57 {dimension_numbers = #tpu.dot_dimension_numbers<[1], [0], [0], [1], [0, 0, 1, 1], [], []>} : vector<64x8xbf16>, vector<8x16xbf16>, vector<64x16xf32> -> vector<64x16xf32>
    %46 = arith.addf %40, %45 : vector<64x16xf32>
    %c0_58 = arith.constant 0 : index
    %c0_59 = arith.constant 0 : index
    %c0_60 = arith.constant 0 : index
    %c46 = arith.constant 46 : index
    %c0_61 = arith.constant 0 : index
    %47 = vector.load %arg2[%c0_58, %c0_59, %c0_60, %c46, %c0_61] : memref<1x1x1x112x8xbf16, #tpu.memory_space<vmem>>, vector<1x1x1x64x8xbf16>
    %48 = vector.shape_cast %47 : vector<1x1x1x64x8xbf16> to vector<64x8xbf16>
    %c8 = arith.constant 8 : index
    %c0_62 = arith.constant 0 : index
    %c0_63 = arith.constant 0 : index
    %49 = vector.load %arg3[%c8, %c0_62, %c0_63] : memref<9x8x16xbf16, #tpu.memory_space<vmem>>, vector<1x8x16xbf16>
    %50 = vector.shape_cast %49 : vector<1x8x16xbf16> to vector<8x16xbf16>
    %cst_64 = arith.constant dense<0.000000e+00> : vector<64x16xf32>
    %51 = tpu.matmul %48, %50, %cst_64 {dimension_numbers = #tpu.dot_dimension_numbers<[1], [0], [0], [1], [0, 0, 1, 1], [], []>} : vector<64x8xbf16>, vector<8x16xbf16>, vector<64x16xf32> -> vector<64x16xf32>
    %52 = arith.addf %46, %51 : vector<64x16xf32>
    %c0_65 = arith.constant 0 : index
    %c0_66 = arith.constant 0 : index
    %53 = vector.load %arg4[%c0_65, %c0_66] : memref<1x16xf32, #tpu.memory_space<vmem>>, vector<1x16xf32>
    %54 = vector.broadcast %53 : vector<1x16xf32> to vector<64x16xf32>
    %55 = arith.addf %52, %54 : vector<64x16xf32>
    %56 = arith.truncf %55 : vector<64x16xf32> to vector<64x16xbf16>
    %c0_67 = arith.constant 0 : index
    %c0_68 = arith.constant 0 : index
    %c0_69 = arith.constant 0 : index
    %57 = vector.load %arg5[%c0_67, %c0_68, %c0_69] : memref<1x64x16xbf16, #tpu.memory_space<vmem>>, vector<1x64x16xbf16>
    %58 = vector.shape_cast %57 : vector<1x64x16xbf16> to vector<64x16xbf16>
    %59 = vector.shape_cast %56 : vector<64x16xbf16> to vector<1x64x16xbf16>
    tpu.vector_store %arg5[%c0_67, %c0_68, %c0_69], %59 {strides = array<i32>} : memref<1x64x16xbf16, #tpu.memory_space<vmem>>, vector<1x64x16xbf16>,
    return
  }
  func.func @transform_0(%arg0: i32, %arg1: i32) -> (i32, i32, i32, i32, i32) {
    %c0_i32 = arith.constant 0 : i32
    %c0_i32_0 = arith.constant 0 : i32
    %c0_i32_1 = arith.constant 0 : i32
    %c0_i32_2 = arith.constant 0 : i32
    return %arg0, %arg1, %c0_i32, %c0_i32_0, %c0_i32_1 : i32, i32, i32, i32, i32
  }
  func.func @transform_1(%arg0: i32, %arg1: i32) -> (i32, i32, i32) {
    %c0_i32 = arith.constant 0 : i32
    %c0_i32_0 = arith.constant 0 : i32
    %c0_i32_1 = arith.constant 0 : i32
    %c0_i32_2 = arith.constant 0 : i32
    return %c0_i32, %c0_i32_0, %c0_i32_1 : i32, i32, i32
  }
  func.func @transform_2(%arg0: i32, %arg1: i32) -> (i32, i32) {
    %c0_i32 = arith.constant 0 : i32
    %c0_i32_0 = arith.constant 0 : i32
    %c0_i32_1 = arith.constant 0 : i32
    return %c0_i32, %c0_i32_0 : i32, i32
  }
  func.func @transform_3(%arg0: i32, %arg1: i32) -> (i32, i32, i32) {
    %c0_i32 = arith.constant 0 : i32
    %c0_i32_0 = arith.constant 0 : i32
    return %arg0, %arg1, %c0_i32 : i32, i32, i32
  }
}

</mosaic_0001>

<bundles_post_ra>
// kernel: tpu_custom_call.1
= control target key start
LH: loop header
LB: loop body
LE: loop exit
PB: predicated region body
PF: predicated region fallthrough
CT: control target
= control target key end

     0   :  { %s1825_s12 = smov 0   ;;  %s1827_s13 = smov 0   ;;  %s2144_s0 = inlined_call_operand.vmem [shape: bf16[1,9,1,112,8], index: 0, kind: input, shape index: {}]   ;;  %s2145_s1 = inlined_call_operand.vmem [shape: bf16[9,8,16], index: 1, kind: input, shape index: {}]   ;;  %s2146_s2 = inlined_call_operand.vmem [shape: f32[1,16], index: 2, kind: input, shape index: {}]   ;;  %s2147_s3 = inlined_call_operand.vmem [shape: bf16[1,576,16], index: 3, kind: output, shape index: {}]  }
   0x1   :  { %s1829_s14 = smov 0  }
   0x2 LB: > { %s22_s15 = sadd.s32 1, %s1799_s13  ;;  %p1432_p0 = scmp.ge.s32.totalorder %s1803_s14, 1  ;;  %s1803_s14 = sphi %s1829_s14, %s13_s14   ;;  %s1799_s13 = sphi %s1827_s13, %s2149_s13   ;;  %s1795_s12 = sphi %s1825_s12, %s2148_s12  }
   0x3   : > { %p23_p1 = scmp.ge.s32.totalorder %s22_s15, 9  ;;  %p157_p2 = scmp.lt.s32.totalorder %s1803_s14, 10 }
   0x5   : > { %s2151_s15 = smov (%p23_p1, %s22_s15), 0  ;;  %p158_p3 = pnand %p1432_p0, %p157_p2 }
   0x6   : > { %v1436_v0 = vld [vmem:[%s2145_s1 + $0x4] sm:$0xf] (!%p158_p3)  ;;  %vm294_vm0 = vcmask (!%p158_p3), 1043456   ;;  %v1851_v1 = vld [vmem:[%s2145_s1 + $0x10] sm:$0xf] (!%p158_p3)  ;;  %p191_p4 = scmp.lt.s32.totalorder (!%p158_p3), %s1795_s12, 8 }
   0x7   : > { %161 = sbr.rel (%p158_p3) target bundleno = 324 (0x144), region = 32  ;;  %1723 = vmatprep.subr.msk.bf16.mxu1 (!%p158_p3), %vm294_vm0, %v1436_v0  ;;  %1727 = vmatprep.subr.msk.bf16.mxu0 (!%p158_p3), %vm294_vm0, %v1851_v1  ;;  %v296_v2 = vsel (!%p158_p3), %vm294_vm0, %v1436_v0, 0  ;;  %v1860_v3 = vsel (!%p158_p3), %vm294_vm0, %v1851_v1, 0  ;;  %v217_v4 = vld [vmem:[%s2145_s1] sm:$0xf] (!%p158_p3)  ;;  %vm281_vm2 = vcmask (!%p158_p3), 64512  }
   0x8   : > { %1568 = vmatpush3.bf16.msra.mxu1 (!%p158_p3), %v296_v2  ;;  %1608 = vmatpush3.bf16.msra.mxu0 (!%p158_p3), %v1860_v3  ;;  %v1871_v5 = vld [vmem:[%s2145_s1 + $0x14] sm:$0xf] (!%p158_p3)  ;;  %vm244_vm1 = vsmask.f32 (!%p158_p3), 7424  ;;  %vm681_vm3 = vsmask.f32 (!%p158_p3), 4352 }
   0x9   : > { %1724 = vmatprep.subr.msk.bf16.mxu1 (!%p158_p3), %vm294_vm0, %v217_v4  ;;  %1729 = vmatprep.subr.msk.bf16.mxu0 (!%p158_p3), %vm294_vm0, %v1871_v5  ;;  %v372_v21 = vsel (!%p158_p3), %vm294_vm0, %v217_v4, 0  ;;  %v1450_v52 = vld [vmem:[%s2145_s1 + $0x8] sm:$0xf] (!%p158_p3)  ;;  %v833_v59 = vsel (!%p158_p3), %vm294_vm0, %v1871_v5, 0  ;;  %v1481_v0 = vld [vmem:[%s2145_s1 + $0x18] sm:$0xf] (!%p158_p3) }
   0xa   : > { %vm942_vm4 = vcmask (!%p158_p3), 1045504   ;;  %vm445_vm5 = vcmask (!%p158_p3), 1046528   ;;  %vm1046_vm6 = vsmask.f32 (!%p158_p3), 5376  ;;  %vm577_vm7 = vcmask (!%p158_p3), 1044480   ;;  %s1434_s16 = sshll.u32 (!%p158_p3), %s1795_s12, 3 }
   0xb   : > { %p201_p5 = scmp.lt.s32.totalorder (!%p158_p3), %s1434_s16, 71  ;;  %vm1329_vm8 = vcmask (!%p158_p3), 125952  }
   0xe   : > { %s192_s20 = scalar_select %p191_p4, %s1795_s12, 8 }
   0xf   : > { %s2153_s16 = smov (!%p201_p5, %s1434_s16), 71 }
  0x10   : > { %s1733_s25 = smul.u32 56, %s192_s20  ;;  %s1435_s19 = sshll.u32 %s2153_s16, 2 }
  0x11   : > { %s2117_s22 = scalar_lea.vmem %s2147_s3, %s1435_s19 }
  0x12   : > { %s1878_s28 = scalar_lea.vmem %s2144_s0, %s1733_s25 }
  0x13   : > { %v209_v6 = vld [vmem:[%s1878_s28] sm:$0xf]  ;;  %v1882_v7 = vld [vmem:[%s1878_s28 + $0x4] sm:$0xf]  ;;  %v1888_v9 = vld [vmem:[%s1878_s28 + $0x8] sm:$0xff]  }
  0x14   : > { %v1885_v8 = vcombine.low %v209_v6, %v1882_v7  ;;  %v543_v10 = vld [vmem:[%s1878_s28 + $0x8] sm:$0x8]  ;;  %v1892_v11 = vld [vmem:[%s1878_s28 + $0xc] sm:$0xf]  ;;  %v1895_v12 = vld [vmem:[%s1878_s28 + $0x10] sm:$0xf] }
  0x15   : > { %v1898_v13 = vld [vmem:[%s1878_s28 + $0x14] sm:$0xf]  ;;  %v253_v16 = vshll.u32 %v1888_v9, 16  ;;  %v257_v17 = vshrl.u32 %v1888_v9, 16  ;;  %v1905_v18 = vcombine.low %v543_v10, %v1892_v11  ;;  %v1916_v22 = vld [vmem:[%s1878_s28 + $0x18] sm:$0xf]  ;;  %v1473_v58 = vcombine.low %v1892_v11, %v1895_v12 }
  0x16   : > { %v246_v14 = vshrl.u32 %v1885_v8, 16  ;;  %v248_v15 = vshll.u32 %v1885_v8, 16  ;;  %v1909_v19 = vcombine.low %v1895_v12, %v1898_v13  ;;  %v1912_v20 = vld [vmem:[%s1878_s28 + $0x10] sm:$0xff]   ;;  %v1919_v25 = vld [vmem:[%s1878_s28 + $0x1c] sm:$0xf]  ;;  %v1474_v11 = vcombine.low %v1898_v13, %v1916_v22 }
  0x17   : > { %v255_v24 = vrot.slane %v253_v16, 1  ;;  %v683_v26 = vshrl.u32 %v1905_v18, 16  ;;  %v686_v27 = vshll.u32 %v1905_v18, 16  ;;  %v261_v32 = vshll.u32 %v1912_v20, 16  ;;  %v1931_v34 = vld [vmem:[%s1878_s28 + $0x18] sm:$0xff]  }
  0x18   : > { %v250_v23 = vrot.slane %v248_v15, 1  ;;  %v691_v28 = vshrl.u32 %v1909_v19, 16  ;;  %v694_v29 = vshll.u32 %v1909_v19, 16  ;;  %v1928_v33 = vcombine.low %v1916_v22, %v1919_v25  ;;  %v1937_v43 = vld [vmem:[%s1878_s28 + $0x20] ss:$0 sps:$4 sm:$0x11]  }
  0x19   : > { %v259_v31 = vor.u32 %v257_v17, %v255_v24  ;;  %v685_v35 = vrot.slane %v683_v26, 3  ;;  %v688_v36 = vrot.slane %v686_v27, 4  ;;  %v263_v40 = vrot.slane %v261_v32, 1  ;;  %v1973_v4 = vld [vmem:[%s1878_s28 + $0x20] sm:$0xf] }
  0x1a   : > { %v251_v30 = vor.u32 %v250_v23, %v246_v14  ;;  %v693_v37 = vrot.slane %v691_v28, 3  ;;  %v696_v38 = vrot.slane %v694_v29, 4  ;;  %v700_v41 = vshrl.u32 %v1928_v33, 16  ;;  %v908_v5 = vld [vmem:[%s1878_s28 + $0x14] sm:$0xc]  ;;  %v1988_v16 = vld [vmem:[%s1878_s28 + $0x1c] sm:$0xff]  }
  0x1b   : > { %v703_v42 = vshll.u32 %v1928_v33, 16  ;;  %v689_v44 = vor.u32 %v688_v36, %v685_v35  ;;  %v265_v46 = vshrl.u32 %v1912_v20, 16  ;;  %v269_v47 = vshll.u32 %v1931_v34, 16  ;;  %v1977_v6 = vld [vmem:[%s1878_s28 + $0x18] sm:$0xf]  ;;  %v2016_v28 = vld [vmem:[%s1878_s28 + $0x24] sm:$0xff]  }
  0x1c   : > { %v256_v39 = vsel %vm244_vm1, %v251_v30, %v255_v24  ;;  %v697_v45 = vor.u32 %v696_v38, %v693_v37  ;;  %v264_v48 = vsel %vm244_vm1, %v259_v31, %v263_v40  ;;  %v702_v49 = vrot.slane %v700_v41, 3  ;;  %v439_v10 = vld [vmem:[%s1878_s28] sm:$0xe]  ;;  %v1491_v13 = vld [vmem:[%s2145_s1 + $0x1c] sm:$0xf]  ;;  %v2021_v31 = vld [vmem:[%s1878_s28 + $0x2c] sm:$0xff]  }
  0x1d   : > { %1569 = vmatprep.mubr.msk.bf16.mxu1 %vm281_vm2, %v256_v39  ;;  %v705_v50 = vrot.slane %v703_v42, 4  ;;  %v273_v51 = vshrl.u32 %v1931_v34, 16  ;;  %v267_v54 = vor.u32 %v265_v46, %v263_v40  ;;  %v271_v55 = vrot.slane %v269_v47, 1  ;;  %v2001_v22 = vld [vmem:[%s1878_s28 + $0x24] sm:$0xf] }
  0x1e   : > { %v698_v53 = vsel %vm681_vm3, %v689_v44, %v697_v45  ;;  %1570 = vmatmul.mubr.msk.bf16.vlgmr.msra.gmra.mrb[0].mxu1 %vm281_vm2, %v264_v48  ;;  %v277_v56 = vshll.u32 %v1937_v43, 16  ;;  %v965_v12 = vsel %vm294_vm0, %v1481_v0, 0  ;;  %v468_v14 = vsel %vm294_vm0, %v1450_v52, 0  ;;  %v1777_v46 = vld [vmem:[%s1878_s28 + $0x34] ss:$0 sps:$4 sm:$0x33]  }
  0x1f   : > { %1609 = vmatprep.mubr.msk.bf16.mxu0 %vm281_vm2, %v698_v53  ;;  %1578 = vmatpush3.bf16.msra.mxu1 %v372_v21  ;;  %v1951_v57 = vor.u32 %v705_v50, %v702_v49  ;;  %v272_v60 = vsel %vm244_vm1, %v267_v54, %v271_v55  ;;  %v275_v61 = vor.u32 %v273_v51, %v271_v55  ;;  %v1456_v21 = vld [vmem:[%s2145_s1 + $0xc] sm:$0xf]  ;;  %v944_v24 = vrot.slane %v1988_v16, 2 }
  0x20   : > { %v279_v62 = vrot.slane %v277_v56, 1  ;;  %1725 = vmatprep.subr.msk.bf16.mxu1 %vm294_vm0, %v1450_v52  ;;  %1573 = vmatprep.mubr.msk.bf16.mxu1 %vm281_vm2, %v272_v60  ;;  %v1475_v15 = vcombine.low %v1919_v25, %v1973_v4  ;;  %v1451_v17 = vcombine.low %v439_v10, %v1882_v7  ;;  %v2004_v7 = vld [vmem:[%s1878_s28 + $0x28] sm:$0xf]  ;;  %v447_v26 = vrot.slane %v1888_v9, 1 }
  0x21   : > { %v707_v63 = vsel %vm681_vm3, %v697_v45, %v1951_v57  ;;  %v1476_v27 = vcombine.low %v2001_v22, %v2004_v7  ;;  %v449_v32 = vrot.slane %v1912_v20, 1  ;;  %v1056_v37 = vshrl.u32 %v1988_v16, 16 }
  0x22   : > { %1610 = vmatmul.mubr.msk.bf16.vlgmr.msra.gmra.mrb[0].mxu0 %vm281_vm2, %v707_v63  ;;  %v280_v2 = vsel %vm244_vm1, %v275_v61, %v279_v62  ;;  %v446_v25 = vrot.slane %v1451_v17, 1  ;;  %v1059_v38 = vshll.u32 %v1988_v16, 16  ;;  %v948_v39 = vrot.slane %v2021_v31, 2 }
  0x23   : > { %1618 = vmatpush3.bf16.msra.mxu0 %v833_v59  ;;  %1619 = vmatprep.mubr.msk.bf16.mxu0 %vm281_vm2, %v1473_v58  ;;  %v451_v40 = vrot.slane %v1931_v34, 1  ;;  %v1104_v42 = vsel %vm294_vm0, %v1491_v13, 0  ;;  %v450_v44 = vsel %vm445_vm5, %v447_v26, %v449_v32  ;;  %v600_v45 = vsel %vm294_vm0, %v1456_v21, 0 }
  0x24   : > { %1730 = vmatprep.subr.msk.bf16.mxu0 %vm294_vm0, %v1481_v0  ;;  %v448_v30 = vsel %vm445_vm5, %v446_v25, %v447_v26  ;;  %v1058_v48 = vrot.slane %v1056_v37, 2  ;;  %v1061_v49 = vrot.slane %v1059_v38, 3  ;;  %v950_v52 = vrot.slane %v1777_v46, 2 }
  0x25   : > { %v452_v51 = vsel %vm445_vm5, %v449_v32, %v451_v40  ;;  %v453_v53 = vrot.slane %v1937_v43, 1  ;;  %v1065_v54 = vshrl.u32 %v2016_v28, 16  ;;  %v1068_v55 = vshll.u32 %v2016_v28, 16 }
  0x26   : > { %1574 = vmatmul.mubr.msk.bf16.gmra.mrb[4].mxu1 %vm281_vm2, %v280_v2  ;;  %v1062_v58 = vor.u32 %v1061_v49, %v1058_v48  ;;  %v578_v59 = vrot.slane %v1905_v18, 3  ;;  %v579_v60 = vrot.slane %v1909_v19, 3  ;;  %v1074_v43 = vshrl.u32 %v2021_v31, 16  ;;  %v2061_v18 = vld [vmem:[%s1878_s28 + $0x34] ss:$0 sps:$4 sm:$0x77]  }
  0x27   : > { %1579 = vmatprep.mubr.msk.bf16.mxu1 %vm281_vm2, %v1885_v8  ;;  %v1482_v8 = vcombine.low %v908_v5, %v1977_v6  ;;  %v1077_v61 = vshll.u32 %v2021_v31, 16  ;;  %v951_v62 = vsel %vm942_vm4, %v948_v39, %v950_v52  ;;  %v454_v63 = vsel %vm445_vm5, %v451_v40, %v453_v53 }
  0x28   : > { %v1067_v0 = vrot.slane %v1065_v54, 2  ;;  %v1070_v2 = vrot.slane %v1068_v55, 3  ;;  %v580_v5 = vsel %vm577_vm7, %v578_v59, %v579_v60  ;;  %v1076_v10 = vrot.slane %v1074_v43, 2  ;;  %v1503_v55 = vld [vmem:[%s2146_s2] ss:$0 sm:$0xff] }
  0x29   : > { %v943_v23 = vrot.slane %v1482_v8, 2  ;;  %v1048_v35 = vshrl.u32 %v1482_v8, 16  ;;  %v1051_v36 = vshll.u32 %v1482_v8, 16  ;;  %v1086_v8 = vshll.u32 %v2061_v18, 16 }
  0x2b   : > { %v945_v29 = vsel %vm942_vm4, %v943_v23, %v944_v24  ;;  %v1053_v47 = vrot.slane %v1051_v36, 3  ;;  %v1088_v26 = vrot.slane %v1086_v8, 3  ;;  %v1467_v36 = vcombine.low %v2004_v7, %v2004_v7 }
  0x2e   : > { %1620 = vmatmul.mubr.msk.bf16.vlgmr.msra.gmra.mrb[0].mxu0 %vm281_vm2, %v1474_v11  ;;  %1580 = vmatmul.mubr.msk.bf16.vlgmr.msra.gmra.mrb[0].mxu1 %vm281_vm2, %v1888_v9  ;;  %v946_v9 = vrot.slane %v2016_v28, 2  ;;  %v1079_v11 = vrot.slane %v1077_v61, 3 }
  0x2f   : > { %1628 = vmatpush3.bf16.msra.mxu0 %v965_v12  ;;  %1588 = vmatpush3.bf16.msra.mxu1 %v468_v14  ;;  %v1071_v12 = vor.u32 %v1070_v2, %v1067_v0  ;;  %v581_v14 = vrot.slane %v1928_v33, 3 }
  0x30   : > { %1623 = vmatprep.mubr.msk.bf16.mxu0 %vm281_vm2, %v1475_v15  ;;  %1583 = vmatprep.mubr.msk.bf16.mxu1 %vm281_vm2, %v1912_v20  ;;  %v947_v41 = vsel %vm942_vm4, %v944_v24, %v946_v9  ;;  %v1050_v20 = vrot.slane %v1048_v35, 2  ;;  %v949_v50 = vsel %vm942_vm4, %v946_v9, %v948_v39  ;;  %v1083_v15 = vshrl.u32 %v2061_v18, 16 }
  0x31   : > { %1731 = vmatprep.subr.msk.bf16.mxu0 %vm294_vm0, %v1491_v13  ;;  %1726 = vmatprep.subr.msk.bf16.mxu1 %vm294_vm0, %v1456_v21  ;;  %v1080_v13 = vor.u32 %v1079_v11, %v1076_v10  ;;  %v1072_v23 = vsel %vm1046_vm6, %v1062_v58, %v1071_v12  ;;  %v582_v24 = vsel %vm577_vm7, %v579_v60, %v581_v14  ;;  %v1186_v39 = vrot.slane %v1988_v16, 3 }
  0x32   : > { %v1054_v56 = vor.u32 %v1053_v47, %v1050_v20  ;;  %v1085_v25 = vrot.slane %v1083_v15, 2  ;;  %v1188_v16 = vrot.slane %v2016_v28, 3  ;;  %v1190_v47 = vrot.slane %v2021_v31, 3 }
  0x33   : > { %v1081_v32 = vsel %vm1046_vm6, %v1071_v12, %v1080_v13 }
  0x34   : > { %v1063_v19 = vsel %vm1046_vm6, %v1054_v56, %v1062_v58  ;;  %v1089_v37 = vor.u32 %v1088_v26, %v1085_v25  ;;  %v1189_v48 = vsel %vm577_vm7, %v1186_v39, %v1188_v16 }
  0x36   : > { %1624 = vmatmul.mubr.msk.bf16.gmra.mrb[4].mxu0 %vm281_vm2, %v1476_v27  ;;  %1584 = vmatmul.mubr.msk.bf16.gmra.mrb[4].mxu1 %vm281_vm2, %v1931_v34  ;;  %v1497_v34 = vld [vmem:[%s2145_s1 + $0x20] sm:$0xf]  ;;  %v1779_v27 = vld [vmem:[%s1878_s28 + $0x28] ss:$0 sps:$4 sm:$0x77]  }
  0x37   : > { %1629 = vmatprep.mubr.msk.bf16.mxu0 %vm281_vm2, %v945_v29  ;;  %1589 = vmatprep.mubr.msk.bf16.mxu1 %vm281_vm2, %v448_v30  ;;  %v1207_v29 = vsel %vm294_vm0, %v1497_v34, 0  ;;  %v585_v38 = vrot.slane %v1779_v27, 3 }
  0x3e   : > { %1630 = vmatmul.mubr.msk.bf16.vlgmr.msra.gmra.mrb[0].mxu0 %vm281_vm2, %v947_v41  ;;  %1590 = vmatmul.mubr.msk.bf16.vlgmr.msra.gmra.mrb[0].mxu1 %vm281_vm2, %v450_v44  ;;  %v718_v41 = vshrl.u32 %v1467_v36, 16  ;;  %v1090_v44 = vsel %vm1046_vm6, %v1080_v13, %v1089_v37 }
  0x3f   : > { %1638 = vmatpush3.bf16.msra.mxu0 %v1104_v42  ;;  %1598 = vmatpush3.bf16.msra.mxu1 %v600_v45  ;;  %v721_v42 = vshll.u32 %v1467_v36, 16 }
  0x40   : > { %1633 = vmatprep.mubr.msk.bf16.mxu0 %vm281_vm2, %v949_v50  ;;  %1593 = vmatprep.mubr.msk.bf16.mxu1 %vm281_vm2, %v452_v51  ;;  %v720_v46 = vrot.slane %v718_v41, 3  ;;  %v1192_v51 = vrot.slane %v2061_v18, 3 }
  0x41   : > { %1732 = vmatprep.subr.msk.bf16.mxu0 %vm294_vm0, %v1497_v34  ;;  %1728 = vmatprep.subr.msk.bf16.mxu1 %vm294_vm0, %v1851_v1  ;;  %v1460_v1 = vcombine.low %v1973_v4, %v2001_v22  ;;  %v1179_v22 = vld [vmem:[%s1878_s28 + $0x14] sm:$0x8]  ;;  %v723_v20 = vrot.slane %v721_v42, 4 }
  0x42   : > { %v1498_v33 = vcombine.low %v1179_v22, %v1977_v6  ;;  %v1193_v28 = vsel %vm577_vm7, %v1190_v47, %v1192_v51 }
  0x43   : > { %v709_v17 = vshrl.u32 %v1460_v1, 16  ;;  %v712_v4 = vshll.u32 %v1460_v1, 16  ;;  %v583_v21 = vrot.slane %v1460_v1, 3  ;;  %v724_v49 = vor.u32 %v723_v20, %v720_v46 }
  0x44   : > { %v1185_v6 = vrot.slane %v1498_v33, 3 }
  0x45   : > { %v711_v30 = vrot.slane %v709_v17, 3  ;;  %v714_v9 = vrot.slane %v712_v4, 4  ;;  %v584_v35 = vsel %vm577_vm7, %v581_v14, %v583_v21  ;;  %v586_v45 = vsel %vm577_vm7, %v583_v21, %v585_v38 }
  0x46   : > { %1634 = vmatmul.mubr.msk.bf16.gmra.mrb[4].mxu0 %vm281_vm2, %v951_v62  ;;  %1594 = vmatmul.mubr.msk.bf16.gmra.mrb[4].mxu1 %vm281_vm2, %v454_v63  ;;  %v1187_v7 = vsel %vm577_vm7, %v1185_v6, %v1186_v39 }
  0x47   : > { %1639 = vmatprep.mubr.msk.bf16.mxu0 %vm281_vm2, %v1063_v19  ;;  %1599 = vmatprep.mubr.msk.bf16.mxu1 %vm281_vm2, %v580_v5  ;;  %v715_v40 = vor.u32 %v714_v9, %v711_v30 }
  0x49   : > { %v725_v50 = vsel %vm681_vm3, %v715_v40, %v724_v49 }
  0x4e   : > { %1640 = vmatmul.mubr.msk.bf16.vlgmr.msra.gmra.mrb[0].mxu0 %vm281_vm2, %v1072_v23  ;;  %1600 = vmatmul.mubr.msk.bf16.vlgmr.msra.gmra.mrb[0].mxu1 %vm281_vm2, %v582_v24 }
  0x4f   : > { %1648 = vmatpush3.bf16.msra.mxu0 %v1207_v29  ;;  %1658 = vmatpush3.bf16.msra.mxu1 %v1860_v3  ;;  %v716_v3 = vsel %vm681_vm3, %v1951_v57, %v715_v40  ;;  %v1191_v57 = vsel %vm577_vm7, %v1188_v16, %v1190_v47 }
  0x50   : > { %1643 = vmatprep.mubr.msk.bf16.mxu0 %vm281_vm2, %v1081_v32  ;;  %1603 = vmatprep.mubr.msk.bf16.mxu1 %vm281_vm2, %v584_v35 }
  0x56   : > { %1644 = vmatmul.mubr.msk.bf16.gmra.mrb[4].mxu0 %vm281_vm2, %v1090_v44  ;;  %1604 = vmatmul.mubr.msk.bf16.gmra.mrb[4].mxu1 %vm281_vm2, %v586_v45 }
  0x57   : > { %1649 = vmatprep.mubr.msk.bf16.mxu0 %vm281_vm2, %v1187_v7  ;;  %1613 = vmatprep.mubr.msk.bf16.mxu1 %vm281_vm2, %v716_v3 }
  0x5e   : > { %1650 = vmatmul.mubr.msk.bf16.vlgmr.msra.gmra.mrb[0].mxu0 %vm281_vm2, %v1189_v48 }
  0x5f   : > { %1653 = vmatprep.mubr.msk.bf16.mxu0 %vm281_vm2, %v1191_v57 }
  0x62   : > { %1614 = vmatmul.mubr.msk.bf16.vlgmr.msra.gmra.mrb[4].mxu1 %vm281_vm2, %v725_v50 }
  0x66   : > { %1654 = vmatmul.mubr.msk.bf16.gmra.mrb[4].mxu0 %vm281_vm2, %v1193_v28 }
 0x121   : > { %v1601_v31 = vpop.f32.mrb[0].mxu1 }
 0x122   : > { %v636_v34 = vpop.f32.mrb[1].mxu1 }
 0x123   : > { %v1602_v52 = vpop.f32.mrb[2].mxu1 }
 0x124   : > { %v639_v53 = vpop.f32.mrb[3].mxu1 }
 0x131   : > { %v1651_v54 = vpop.f32.mrb[0].mxu0 }
 0x132   : > { %v1659_v56 = vadd.f32 %v1651_v54, %v1601_v31  ;;  %v1243_v58 = vpop.f32.mrb[1].mxu0 }
 0x133   : > { %v1660_v59 = vadd.f32 %v1243_v58, %v636_v34  ;;  %v1652_v60 = vpop.f32.mrb[2].mxu0 }
 0x134   : > { %v1291_v43 = vadd.f32 %v1659_v56, %v1503_v55  ;;  %v1661_v61 = vadd.f32 %v1652_v60, %v1602_v52  ;;  %v1246_v62 = vpop.f32.mrb[3].mxu0 }
 0x135   : > { %v1289_v63 = vadd.f32 %v1660_v59, %v1503_v55  ;;  %v1662_v0 = vadd.f32 %v1246_v62, %v639_v53  ;;  %v1615_v2 = vpop.f32.mrb[4].mxu1 }
 0x136   : > { %v1516_v18 = vpack.c.bf16 %v1291_v43, %v1291_v43  ;;  %v1292_v19 = vadd.f32 %v1661_v61, %v1503_v55  ;;  %v791_v5 = vpop.f32.mrb[5].mxu1 }
 0x137   : > { %v1514_v1 = vpack.c.bf16 %v1289_v63, %v1289_v63  ;;  %v1290_v10 = vadd.f32 %v1662_v0, %v1503_v55  ;;  %v1616_v11 = vpop.f32.mrb[6].mxu1 }
 0x138   : > { %1332 = vst.msk [vmem:[%s2117_s22 + $0x8] sm:$0xf] %vm1329_vm8, %v1516_v18  ;;  %v1517_v12 = vpack.c.bf16 %v1292_v19, %v1292_v19  ;;  %v794_v14 = vpop.f32.mrb[7].mxu1 }
 0x139   : > { %1330 = vst.msk [vmem:[%s2117_s22] sm:$0xf] %vm1329_vm8, %v1514_v1  ;;  %v1515_v15 = vpack.c.bf16 %v1290_v10, %v1290_v10  ;;  %v1655_v8 = vpop.f32.mrb[4].mxu0 }
 0x13a   : > { %1333 = vst.msk [vmem:[%s2117_s22 + $0xc] sm:$0xf] %vm1329_vm8, %v1517_v12  ;;  %v1663_v17 = vadd.f32 %v1655_v8, %v1615_v2  ;;  %v1259_v4 = vpop.f32.mrb[5].mxu0 }
 0x13b   : > { %1331 = vst.msk [vmem:[%s2117_s22 + $0x4] sm:$0xf] %vm1329_vm8, %v1515_v15  ;;  %v1664_v13 = vadd.f32 %v1259_v4, %v791_v5  ;;  %v1656_v21 = vpop.f32.mrb[6].mxu0 }
 0x13c   : > { %v1295_v22 = vadd.f32 %v1663_v17, %v1503_v55  ;;  %v1665_v23 = vadd.f32 %v1656_v21, %v1616_v11  ;;  %v1262_v24 = vpop.f32.mrb[7].mxu0 }
 0x13d   : > { %v1293_v25 = vadd.f32 %v1664_v13, %v1503_v55  ;;  %v1666_v26 = vadd.f32 %v1262_v24, %v794_v14 }
 0x13e   : > { %v1520_v27 = vpack.c.bf16 %v1295_v22, %v1295_v22  ;;  %v1296_v29 = vadd.f32 %v1665_v23, %v1503_v55 }
 0x13f   : > { %v1518_v33 = vpack.c.bf16 %v1293_v25, %v1293_v25  ;;  %v1294_v30 = vadd.f32 %v1666_v26, %v1503_v55 }
 0x140   : > { %1336 = vst.msk [vmem:[%s2117_s22 + $0x18] sm:$0xf] %vm1329_vm8, %v1520_v27  ;;  %v1521_v9 = vpack.c.bf16 %v1296_v29, %v1296_v29 }
 0x141   : > { %1334 = vst.msk [vmem:[%s2117_s22 + $0x10] sm:$0xf] %vm1329_vm8, %v1518_v33  ;;  %v1519_v32 = vpack.c.bf16 %v1294_v30, %v1294_v30 }
 0x142   : > { %1337 = vst.msk [vmem:[%s2117_s22 + $0x1c] sm:$0xf] %vm1329_vm8, %v1521_v9 }
 0x143   : > { %1335 = vst.msk [vmem:[%s2117_s22 + $0x14] sm:$0xf] %vm1329_vm8, %v1519_v32 }
 0x144 PF: > { %s13_s14 = sadd.s32 1, %s1803_s14   ;;  %s2148_s12 = smov %s1799_s13 }
 0x145   : > { %p10_p6 = scmp.ge.s32.totalorder %s13_s14, 11   ;;  %s2149_s13 = smov %s2151_s15 }
 0x147   :  { %12 = sbr.rel (!%p10_p6) target bundleno = 2 (0x2), region = 70 }

</bundles_post_ra>
